<compile_context>
chip_gen: v6e
topology: v6e:2x2x1
jax: 0.10.0
libtpu: 0.0.40
codegen_flags: <defaults>
</compile_context>

<pallas_src>
import functools

import jax
import jax.numpy as jnp
from jax.experimental import pallas as pl
from jax.experimental.pallas import tpu as pltpu

EPS = 1e-5


def _round_up(n, m):
    return ((n + m - 1) // m) * m


def _stage_adaln_kernel(sid_ref, x_ref, ln_ref, st_ref, o_ref, *, inv_d):
    # x_ref : (1, TS, Dp) tile of the input for batch b, seq-tile s.
    # ln_ref: (2, Dp)  -> [ln_weight; ln_bias]      (constant across the grid)
    # st_ref: (1, 2, Dp) -> [stage_w[sid]; stage_b[sid]] (gathered per batch elem)
    x = x_ref[...].astype(jnp.float32)                        # (1, TS, Dp)

    # Single-pass statistics over the last (lane) axis.  Padded columns are
    # zero, so dividing by the *real* D (inv_d) keeps mean/var exact.
    s1 = jnp.sum(x, axis=-1, keepdims=True)                   # (1, TS, 1)
    s2 = jnp.sum(x * x, axis=-1, keepdims=True)               # (1, TS, 1)
    mean = s1 * inv_d
    var = jnp.maximum(s2 * inv_d - mean * mean, 0.0)
    inv = jax.lax.rsqrt(var + EPS)

    # Fused affine: (y*ln_w + ln_b)*sw + sb == y*(ln_w*sw) + (ln_b*sw + sb).
    ln_w = ln_ref[0, :].astype(jnp.float32)                   # (Dp,)
    ln_b = ln_ref[1, :].astype(jnp.float32)
    sw = st_ref[0, 0, :].astype(jnp.float32)
    sb = st_ref[0, 1, :].astype(jnp.float32)
    w_comb = (ln_w * sw).reshape(1, 1, -1)                    # (1, 1, Dp)
    b_comb = (ln_b * sw + sb).reshape(1, 1, -1)

    y = (x - mean) * inv
    o_ref[...] = (y * w_comb + b_comb).astype(o_ref.dtype)


def stage_adaln(x, stage_id, ln_weight, ln_bias, stage_w, stage_b):
    """x: (B, ..., D); stage_id: (B,) int; ln_weight/ln_bias: (D,);
    stage_w/stage_b: (num_stage, D)."""
    orig_shape = x.shape
    B = orig_shape[0]
    D = orig_shape[-1]
    # Flatten any middle dims into a single "sequence" axis (module allows (B, ..., D)).
    S = 1
    for d in orig_shape[1:-1]:
        S *= d
    x3 = x.reshape(B, S, D)

    num_stage = stage_w.shape[0]
    itemsize = jnp.dtype(x.dtype).itemsize
    sub = max(8, 32 // itemsize)          # sublane multiple: 8 (f32) / 16 (bf16)

    # Lane-dense last dim and sublane-aligned, VMEM-friendly sequence tile.
    Dp = _round_up(D, 128)
    ts = max(sub, min(512, (4 << 20) // max(Dp * itemsize, 1)))   # ~4 MiB tile target
    ts = max(sub, (ts // sub) * sub)
    ts = min(ts, _round_up(S, sub))
    Sp = _round_up(S, ts)

    xp = x3
    if (Sp, Dp) != (S, D):
        xp = jnp.pad(x3, ((0, 0), (0, Sp - S), (0, Dp - D)))
    pad_d = Dp - D
    if pad_d:
        ln_w_p = jnp.pad(ln_weight, (0, pad_d))
        ln_b_p = jnp.pad(ln_bias, (0, pad_d))
        sw_p = jnp.pad(stage_w, ((0, 0), (0, pad_d)))
        sb_p = jnp.pad(stage_b, ((0, 0), (0, pad_d)))
    else:
        ln_w_p, ln_b_p, sw_p, sb_p = ln_weight, ln_bias, stage_w, stage_b

    # Pack params: one constant (2, Dp) operand + one gathered (num_stage, 2, Dp)
    # operand -> 2 small DMAs per grid step instead of 4.
    ln_packed = jnp.stack([ln_w_p, ln_b_p], axis=0).astype(jnp.float32)      # (2, Dp)
    st_packed = jnp.stack([sw_p, sb_p], axis=1).astype(jnp.float32)          # (ns, 2, Dp)

    # Clamp stage ids so a bad id cannot turn into an OOB DMA in the gather.
    sid = jnp.clip(stage_id.astype(jnp.int32), 0, num_stage - 1)

    grid = (B, Sp // ts)
    grid_spec = pltpu.PrefetchScalarGridSpec(
        num_scalar_prefetch=1,                                   # stage_id -> SMEM
        grid=grid,
        in_specs=[
            pl.BlockSpec((1, ts, Dp), lambda b, s, sid: (b, s, 0)),      # x tile
            pl.BlockSpec((2, Dp), lambda b, s, sid: (0, 0)),             # ln params
            pl.BlockSpec((1, 2, Dp), lambda b, s, sid: (sid[b], 0, 0)),  # stage gather
        ],
        out_specs=pl.BlockSpec((1, ts, Dp), lambda b, s, sid: (b, s, 0)),
    )

    tile_bytes = ts * Dp * itemsize
    # 2x double-buffered input + 2x output tiles + params + headroom; cap at
    # 48 MiB so it stays safe on v7x's 64 MiB VMEM.
    vmem_limit = int(min(48 << 20, max(16 << 20, 4 * tile_bytes + (4 << 20))))

    out = pl.pallas_call(
        functools.partial(_stage_adaln_kernel, inv_d=1.0 / D),
        out_shape=jax.ShapeDtypeStruct((B, Sp, Dp), x.dtype),
        grid_spec=grid_spec,
        compiler_params=pltpu.CompilerParams(
            dimension_semantics=("parallel", "parallel"),
            vmem_limit_bytes=vmem_limit,
        ),
    )(sid, xp, ln_packed, st_packed)

    if (Sp, Dp) != (S, D):
        out = out[:, :S, :D]
    return out.reshape(orig_shape)


def stage_adaln_ref(x, stage_id, ln_weight, ln_bias, stage_w, stage_b):
    xf = x.astype(jnp.float32)
    mean = jnp.mean(xf, axis=-1, keepdims=True)
    var = jnp.mean((xf - mean) ** 2, axis=-1, keepdims=True)
    y = (xf - mean) * jax.lax.rsqrt(var + EPS)
    y = y * ln_weight + ln_bias
    c_w = stage_w[stage_id][:, None, :]   # expand over seq axis
    c_b = stage_b[stage_id][:, None, :]
    return (y * c_w + c_b).astype(x.dtype)


if __name__ == "__main__":
    B, S, D = 2, 8, 32
    num_stage = 3

    key = jax.random.PRNGKey(0)
    kx, ks = jax.random.split(key)
    x = jax.random.normal(kx, (B, S, D), dtype=jnp.float32)
    stage_id = jax.random.randint(ks, (B,), 0, num_stage, dtype=jnp.int32)

    # Deterministic synthetic parameters (shapes from __init__):
    #   layer_norm weight/bias: (D,) ; stage_w/stage_b: (num_stage, D)
    ln_weight = 1.0 + 0.01 * jnp.arange(D, dtype=jnp.float32)
    ln_bias = 0.05 * jnp.arange(D, dtype=jnp.float32) - 0.5
    stage_w = 1.0 + 0.1 * jnp.arange(num_stage * D, dtype=jnp.float32).reshape(num_stage, D) / D
    stage_b = 0.02 * jnp.arange(num_stage * D, dtype=jnp.float32).reshape(num_stage, D) - 0.3

    out = stage_adaln(x, stage_id, ln_weight, ln_bias, stage_w, stage_b)
    out = jax.block_until_ready(out)

    ref = stage_adaln_ref(x, stage_id, ln_weight, ln_bias, stage_w, stage_b)
    assert out.shape == ref.shape and out.dtype == ref.dtype
    assert jnp.allclose(out, ref, atol=1e-5, rtol=1e-5), "mismatch vs reference"

    print("KERNEL_OK")
</pallas_src>

<mosaic_0001>
module attributes {stable_mosaic.version = 11 : i64} {
  func.func @_stage_adaln_kernel(%arg0: i32, %arg1: i32, %arg2: memref<2xi32, #tpu.memory_space<smem>>, %arg3: memref<1x8x128xf32, #tpu.memory_space<vmem>>, %arg4: memref<2x128xf32, #tpu.memory_space<vmem>>, %arg5: memref<1x2x128xf32, #tpu.memory_space<vmem>>, %arg6: memref<1x8x128xf32, #tpu.memory_space<vmem>>) attributes {dimension_semantics = [#tpu.dimension_semantics<parallel>, #tpu.dimension_semantics<parallel>], iteration_bounds = array<i64: 2, 1>, scalar_prefetch = 1 : i64, scratch_operands = 0 : i64, tpu.core_type = #tpu.core_type<tc>, window_params = [{transform_indices = @transform_0, window_bounds = array<i64: 1, 8, 128>}, {pipeline_mode = #tpu.pipeline_mode<synchronous>, transform_indices = @transform_1, window_bounds = array<i64: 2, 128>}, {transform_indices = @transform_2, window_bounds = array<i64: 1, 2, 128>}, {transform_indices = @transform_3, window_bounds = array<i64: 1, 8, 128>}]} {
    %c0 = arith.constant 0 : index
    %c0_0 = arith.constant 0 : index
    %c0_1 = arith.constant 0 : index
    %0 = vector.load %arg3[%c0, %c0_0, %c0_1] : memref<1x8x128xf32, #tpu.memory_space<vmem>>, vector<1x8x128xf32>
    %cst = arith.constant dense<0.000000e+00> : vector<1x8xf32>
    %1 = vector.multi_reduction <add>, %0, %cst [2] : vector<1x8x128xf32> to vector<1x8xf32>
    %2 = vector.shape_cast %1 : vector<1x8xf32> to vector<1x8x1xf32>
    %3 = arith.mulf %0, %0 : vector<1x8x128xf32>
    %cst_2 = arith.constant dense<0.000000e+00> : vector<1x8xf32>
    %4 = vector.multi_reduction <add>, %3, %cst_2 [2] : vector<1x8x128xf32> to vector<1x8xf32>
    %5 = vector.shape_cast %4 : vector<1x8xf32> to vector<1x8x1xf32>
    %cst_3 = arith.constant 3.125000e-02 : f32
    %6 = vector.broadcast %cst_3 : f32 to vector<1x8x1xf32>
    %7 = arith.mulf %2, %6 : vector<1x8x1xf32>
    %cst_4 = arith.constant 3.125000e-02 : f32
    %8 = vector.broadcast %cst_4 : f32 to vector<1x8x1xf32>
    %9 = arith.mulf %5, %8 : vector<1x8x1xf32>
    %10 = arith.mulf %7, %7 : vector<1x8x1xf32>
    %11 = arith.subf %9, %10 : vector<1x8x1xf32>
    %cst_5 = arith.constant 0.000000e+00 : f32
    %12 = vector.broadcast %cst_5 : f32 to vector<1x8x1xf32>
    %13 = arith.maximumf %11, %12 : vector<1x8x1xf32>
    %cst_6 = arith.constant 9.99999974E-6 : f32
    %14 = vector.broadcast %cst_6 : f32 to vector<1x8x1xf32>
    %15 = arith.addf %13, %14 : vector<1x8x1xf32>
    %16 = math.rsqrt %15 : vector<1x8x1xf32>
    %c0_7 = arith.constant 0 : index
    %c0_8 = arith.constant 0 : index
    %17 = vector.load %arg4[%c0_7, %c0_8] : memref<2x128xf32, #tpu.memory_space<vmem>>, vector<1x128xf32>
    %18 = vector.shape_cast %17 : vector<1x128xf32> to vector<128xf32>
    %c1 = arith.constant 1 : index
    %c0_9 = arith.constant 0 : index
    %19 = vector.load %arg4[%c1, %c0_9] : memref<2x128xf32, #tpu.memory_space<vmem>>, vector<1x128xf32>
    %20 = vector.shape_cast %19 : vector<1x128xf32> to vector<128xf32>
    %c0_10 = arith.constant 0 : index
    %c0_11 = arith.constant 0 : index
    %c0_12 = arith.constant 0 : index
    %21 = vector.load %arg5[%c0_10, %c0_11, %c0_12] : memref<1x2x128xf32, #tpu.memory_space<vmem>>, vector<1x1x128xf32>
    %22 = vector.shape_cast %21 : vector<1x1x128xf32> to vector<128xf32>
    %c0_13 = arith.constant 0 : index
    %c1_14 = arith.constant 1 : index
    %c0_15 = arith.constant 0 : index
    %23 = vector.load %arg5[%c0_13, %c1_14, %c0_15] : memref<1x2x128xf32, #tpu.memory_space<vmem>>, vector<1x1x128xf32>
    %24 = vector.shape_cast %23 : vector<1x1x128xf32> to vector<128xf32>
    %25 = arith.mulf %18, %22 : vector<128xf32>
    %26 = vector.shape_cast %25 : vector<128xf32> to vector<1x1x128xf32>
    %27 = arith.mulf %20, %22 : vector<128xf32>
    %28 = arith.addf %27, %24 : vector<128xf32>
    %29 = vector.shape_cast %28 : vector<128xf32> to vector<1x1x128xf32>
    %30 = vector.broadcast %7 : vector<1x8x1xf32> to vector<1x8x128xf32>
    %31 = arith.subf %0, %30 : vector<1x8x128xf32>
    %32 = vector.broadcast %16 : vector<1x8x1xf32> to vector<1x8x128xf32>
    %33 = arith.mulf %31, %32 : vector<1x8x128xf32>
    %34 = vector.broadcast %26 : vector<1x1x128xf32> to vector<1x8x128xf32>
    %35 = arith.mulf %33, %34 : vector<1x8x128xf32>
    %36 = vector.broadcast %29 : vector<1x1x128xf32> to vector<1x8x128xf32>
    %37 = arith.addf %35, %36 : vector<1x8x128xf32>
    %c0_16 = arith.constant 0 : index
    %c0_17 = arith.constant 0 : index
    %c0_18 = arith.constant 0 : index
    %38 = vector.load %arg6[%c0_16, %c0_17, %c0_18] : memref<1x8x128xf32, #tpu.memory_space<vmem>>, vector<1x8x128xf32>
    tpu.vector_store %arg6[%c0_16, %c0_17, %c0_18], %37 {strides = array<i32>} : memref<1x8x128xf32, #tpu.memory_space<vmem>>, vector<1x8x128xf32>,
    return
  }
  func.func @transform_0(%arg0: i32, %arg1: i32, %arg2: memref<2xi32, #tpu.memory_space<smem>>) -> (i32, i32, i32) {
    %c0_i32 = arith.constant 0 : i32
    %c0_i32_0 = arith.constant 0 : i32
    return %arg0, %arg1, %c0_i32 : i32, i32, i32
  }
  func.func @transform_1(%arg0: i32, %arg1: i32, %arg2: memref<2xi32, #tpu.memory_space<smem>>) -> (i32, i32) {
    %c0_i32 = arith.constant 0 : i32
    %c0_i32_0 = arith.constant 0 : i32
    %c0_i32_1 = arith.constant 0 : i32
    return %c0_i32, %c0_i32_0 : i32, i32
  }
  func.func @transform_2(%arg0: i32, %arg1: i32, %arg2: memref<2xi32, #tpu.memory_space<smem>>) -> (i32, i32, i32) {
    %0 = arith.index_cast %arg0 : i32 to index
    %1 = memref.load %arg2[%0] : memref<2xi32, #tpu.memory_space<smem>>
    %c0_i32 = arith.constant 0 : i32
    %c0_i32_0 = arith.constant 0 : i32
    %c0_i32_1 = arith.constant 0 : i32
    return %1, %c0_i32, %c0_i32_0 : i32, i32, i32
  }
  func.func @transform_3(%arg0: i32, %arg1: i32, %arg2: memref<2xi32, #tpu.memory_space<smem>>) -> (i32, i32, i32) {
    %c0_i32 = arith.constant 0 : i32
    %c0_i32_0 = arith.constant 0 : i32
    return %arg0, %arg1, %c0_i32 : i32, i32, i32
  }
}

</mosaic_0001>

<bundles_post_ra>
// kernel: tpu_custom_call.1
= control target key start
LH: loop header
LB: loop body
LE: loop exit
PB: predicated region body
PF: predicated region fallthrough
CT: control target
= control target key end

     0   :  { %s690_s15 = smov [#allocation3]   ;;  %s978_s0 = inlined_call_operand.hbm [shape: s32[2], index: 0, kind: input, shape index: {}]   ;;  %s979_s1 = inlined_call_operand.hbm [shape: f32[2,8,128], index: 1, kind: input, shape index: {}]   ;;  %s980_s2 = inlined_call_operand.vmem [shape: f32[2,128], index: 2, kind: input, shape index: {}]   ;;  %s981_s3 = inlined_call_operand.hbm [shape: f32[3,2,128], index: 3, kind: input, shape index: {}]   ;;  %s982_s4 = inlined_call_operand.hbm [shape: f32[2,8,128], index: 4, kind: output, shape index: {}]  }
   0x1   :  { %991 = sst [smem:[#allocation20_spill]] %s979_s1 }
   0x2   :  { %10 = dma.hbm_to_smem %s978_s0, 16, %s690_s15, [#allocation2] }
   0x3   :  { %640 = dma.done.wait [#allocation2], 16 }
   0x4   :  { %641 = vsyncadd [#allocation2], 4294967280 }
   0x5   :  { %12 = sfence }
   0x6   :  { %13 = vsyncpa [#allocation5], 0 }
   0x7   :  { %15 = vsyncpa [#allocation5 + $0x1], 0 }
   0x8   :  { %16 = vsyncpa [#allocation8], 0 }
   0x9   :  { %18 = vsyncpa [#allocation8 + $0x1], 0 }
   0xa   :  { %19 = vsyncpa [#allocation6], 0 }
   0xb   :  { %21 = vsyncpa [#allocation6 + $0x1], 0  ;;  %s722_s18 = smov 0   ;;  %s724_s19 = smov 0  }
   0xc   :  { %s726_s20 = smov 0   ;;  %s728_s21 = smov 0  }
   0xd   :  { %s730_s22 = smov 0   ;;  %s732_s0 = smov 0  }
   0xe   :  { %s734_s23 = smov 0   ;;  %s736_s24 = smov 0  }
   0xf   :  { %s738_s25 = smov 0  }
  0x10 LB: > { %992 = sst [smem:[#allocation16_spill]] %s676_s0  ;;  %s400_s26 = sadd.s32 4294967295, %s688_s25   ;;  %s688_s25 = sphi %s738_s25, %s27_s25   ;;  %s684_s24 = sphi %s736_s24, %s1019_s24   ;;  %s680_s23 = sphi %s734_s23, %s1018_s23   ;;  %s676_s0 = sphi %s732_s0, %s1017_s0   ;;  %s672_s22 = sphi %s730_s22, %s1024_s22   ;;  %s668_s21 = sphi %s728_s21, %s1023_s21   ;;  %s664_s20 = sphi %s726_s20, %s1022_s20   ;;  %s660_s19 = sphi %s724_s19, %s1021_s19   ;;  %s656_s18 = sphi %s722_s18, %s1020_s18  }
  0x11   : > { %993 = sst [smem:[#allocation17_spill]] %s684_s24  ;;  %s401_s27 = sadd.s32 4294967294, %s688_s25  }
  0x12   : > { %s39_s28 = sadd.s32 1, %s684_s24  ;;  %s48_s29 = sadd.s32 1, %s676_s0 }
  0x13   : > { %p41_p0 = scmp.ge.s32.totalorder %s39_s28, 2  ;;  %p55_p1 = scmp.ne.s32.totalorder %s676_s0, %s672_s22 }
  0x14   : > { %p984_p2 = scmp.eq.s32.totalorder %s688_s25, 0  ;;  %p61_p3 = scmp.ne.s32.totalorder %s672_s22, %s668_s21 }
  0x15   : > { %s1026_s28 = smov (%p41_p0, %s39_s28), 0  ;;  %p787_p5 = scmp.eq.s32.totalorder %s400_s26, 0 }
  0x16   : > { %994 = sst [smem:[#allocation18_spill]] %s1026_s28  ;;  %p783_p4 = por %p984_p2, %p55_p1 }
  0x17   : > { %s43_s6 = ssub.s32 %s684_s24, %s1026_s28  ;;  %s794_s7 = sld [smem:[#allocation3 + %s684_s24]] }
  0x18   : > { %p46_p6 = scmp.eq.s32.totalorder %s43_s6, 0  ;;  %p801_p7 = por %p787_p5, %p61_p3 }
  0x19   : > { %s806_s9 = sld [smem:[#allocation3 + %s1026_s28]]  ;;  %p136_p8 = scmp.eq.s32.totalorder %s400_s26, 1 }
  0x1a   : > { %s997_s8 = scalar_select %p801_p7, 1, 0 }
  0x1b   : > { %s809_s10 = scalar_select %p46_p6, %s676_s0, %s48_s29  }
  0x1c   : > { %p814_p9 = por %p136_p8, %p55_p1  ;;  %p142_p10 = scmp.eq.s32.totalorder %s401_s27, 1 }
  0x1d   : > { %998 = sst [smem:[#allocation19_spill]] %s809_s10  ;;  %p985_p12 = scmp.lt.s32.totalorder %s688_s25, 2 }
  0x1e   : > { %s999_s11 = scalar_select %p814_p9, 1, 0 }
  0x1f   : > { %p823_p13 = por %p142_p10, %p61_p3  ;;  %s165_s13 = sand.u32 1, %s676_s0  }
  0x20   : > { %s404_s14 = sshll.u32 %s165_s13, 3  ;;  %s405_s15 = sshll.u32 %s684_s24, 7 }
  0x21   : > { %s1000_s12 = scalar_select %p823_p13, 1, 0 }
  0x22   : > { %s1001_s1 = sld [smem:[#allocation20_spill]]  ;;  %s169_s29 = scalar_lea.vmem [#allocation4], %s404_s14 }
  0x23   : > { %s177_s6 = sshll.u32 %s169_s29, 4  ;;  %p836_p0 = pnand %p985_p12, %p783_p4  ;;  %s178_s6 = int_to_ptr.vmem [resolvable:$true] %s177_s6 }
  0x24   : > { %p408_p1 = scmp.ge.s32.totalorder %s688_s25, 1  ;;  %p201_p3 = scmp.lt.s32.totalorder %s688_s25, 3 }
  0x25   : > { %s166_s28 = scalar_lea.sflag [#allocation5], %s165_s13  ;;  %p524_p6 = pneg %p836_p0 }
  0x26   : > { %s535_s10 = scalar_lea.vmem %s178_s6, 128 }
  0x27   : > { %p536_p8 = scmp.ne.s32.totalorder %s178_s6, %s535_s10 }
  0x28   : > { %s175_s26 = scalar_lea.hbm %s1001_s1, %s405_s15  ;;  %s691_s15 = smov [#allocation4]  }
  0x29   : > { %p538_p10 = pnand %p536_p8, %p524_p6  ;;  %s540_s14 = sshll.u32 %s691_s15, 4  ;;  %s541_s14 = int_to_ptr.vmem [resolvable:$false] %s540_s14 }
  0x2a   : > { %s542_s16 = scalar_lea.vmem %s541_s14, 256  ;;  %p543_p2 = scmp.lt.s32.totalorder %s178_s6, %s541_s14 }
  0x2b   : > { %p539_p11 = pneg %p538_p10  ;;  %p544_p13 = scmp.lt.s32.totalorder %s542_s16, %s535_s10 }
  0x2d   : > { %p545_p4 = por %p544_p13, %p543_p2 }
  0x2f   : > { %p546_p12 = pnand %p545_p4, %p539_p11 }
  0x31   : > { %549 = shalt.err (!%p546_p12)
}
  0x32   : > { %427 = dma.hbm_to_vmem [thread:$0]  (!%p836_p0), %s175_s26, 128, %s178_s6, %s166_s28  }
  0x33   : > { %p850_p2 = pnand %p408_p1, %p201_p3  ;;  %s94_s10 = ssub.s32 %s794_s7, %s806_s9 }
  0x34   : > { %s97_s13 = sadd.s32 1, %s664_s20  ;;  %p95_p11 = scmp.eq.s32.totalorder %s94_s10, 0 }
  0x35   : > { %s1003_s30 = scalar_select %p850_p2, 1, 0 }
  0x36   : > { %p104_p12 = scmp.ne.s32.totalorder %s664_s20, %s660_s19  ;;  %p110_p13 = scmp.ne.s32.totalorder %s660_s19, %s656_s18 }
  0x37   : > { %s184_s17 = sand.u32 1, %s664_s20   ;;  %p1004_p6 = scmp.eq.s32.totalorder %s688_s25, 0 }
  0x38   : > { %s863_s29 = scalar_select %p95_p11, %s664_s20, %s97_s13  }
  0x39   : > { %p106_p8 = por %p104_p12, %p1004_p6  ;;  %p869_p10 = por %p110_p13, %p787_p5 }
  0x3a   : > { %s406_s26 = sshll.u32 %s184_s17, 1  ;;  %p1006_p0 = scmp.lt.s32.totalorder %s688_s25, 2 }
  0x3b   : > { %s1005_s28 = scalar_select %p869_p10, 1, 0 }
  0x3c   : > { %p875_p1 = pnand %p1006_p0, %p106_p8  ;;  %p1008_p3 = pmov %p1006_p0 }
  0x3d   : > { %s417_s7 = scalar_select %p106_p8, [#allocation3], [#allocation10] }
  0x3e   : > { %s418_s9 = scalar_select %p106_p8, %s684_s24, 0 }
  0x3f   : > { %s1028_s7 = smov (!%p1008_p3, %s417_s7), [#allocation11]  ;;  %p1009_p4 = pmov %p1006_p0 }
  0x40   : > { %s188_s27 = scalar_lea.vmem [#allocation7], %s406_s26  ;;  %s185_s13 = scalar_lea.sflag [#allocation8], %s184_s17 }
  0x41   : > { %s1030_s9 = smov (!%p1009_p4, %s418_s9), 0  ;;  %s196_s5 = sshll.u32 %s188_s27, 4  ;;  %s884_s5 = int_to_ptr.vmem [resolvable:$true] %s196_s5 }
  0x42   : > { %s189_s18 = sld [smem:[%s1028_s7 + %s1030_s9]]  ;;  %p552_p11 = pneg %p875_p1 }
  0x43   : > { %s555_s7 = scalar_lea.hbm %s981_s3, 96 }
  0x48   : > { %s407_s15 = sshll.u32 %s189_s18, 5 }
  0x49   : > { %s194_s10 = scalar_lea.hbm %s981_s3, %s407_s15 }
  0x4a   : > { %s550_s1 = scalar_lea.hbm %s194_s10, 32  ;;  %p556_p6 = scmp.lt.s32.totalorder %s194_s10, %s981_s3 }
  0x4b   : > { %p551_p5 = scmp.ne.s32.totalorder %s194_s10, %s550_s1  ;;  %p557_p8 = scmp.lt.s32.totalorder %s555_s7, %s550_s1 }
  0x4d   : > { %p553_p12 = pnand %p552_p11, %p551_p5  ;;  %p558_p0 = por %p557_p8, %p556_p6 }
  0x4f   : > { %p554_p13 = pneg %p553_p12 }
  0x51   : > { %p559_p3 = pnand %p558_p0, %p554_p13 }
  0x53   : > { %562 = shalt.err (!%p559_p3)
}
  0x54   : > { %s563_s17 = scalar_lea.vmem %s884_s5, 32  ;;  %s692_s18 = smov [#allocation7]  }
  0x55   : > { %p564_p4 = scmp.ne.s32.totalorder %s884_s5, %s563_s17  ;;  %s568_s27 = sshll.u32 %s692_s18, 4  ;;  %s569_s27 = int_to_ptr.vmem [resolvable:$false] %s568_s27 }
  0x56   : > { %s570_s0 = scalar_lea.vmem %s569_s27, 64  ;;  %p571_p12 = scmp.lt.s32.totalorder %s884_s5, %s569_s27 }
  0x57   : > { %p566_p9 = pnand %p564_p4, %p552_p11  ;;  %p572_p10 = scmp.lt.s32.totalorder %s570_s0, %s563_s17 }
  0x59   : > { %p567_p5 = pneg %p566_p9  ;;  %p573_p7 = por %p572_p10, %p571_p12 }
  0x5b   : > { %p574_p2 = pnand %p573_p7, %p567_p5 }
  0x5d   : > { %577 = shalt.err (!%p574_p2)
}
  0x5e   : > { %432 = dma.hbm_to_vmem [thread:$0]  (!%p875_p1), %s194_s10, 32, %s884_s5, %s185_s13  }
  0x5f   : > { %p1010_p13 = scmp.ne.s32.totalorder %s1003_s30, 0 }
  0x60   : > { %s906_s1 = sand.u32 (!%p1010_p13), 1, %s672_s22   ;;  %p1011_p7 = scmp.ne.s32.totalorder (!%p1010_p13), %s997_s8, 0 }
  0x61   : > { %205 = sbr.rel (%p1010_p13) target bundleno = 291 (0x123), region = 32  ;;  %s409_s24 = sshll.u32 (!%p1010_p13), %s906_s1, 3 }
  0x62   : > { %s208_s15 = scalar_lea.sflag (!%p1010_p13), [#allocation5], %s906_s1  ;;  %s211_s14 = scalar_lea.vmem (!%p1010_p13), [#allocation4], %s409_s24 }
  0x66   : > { %643 = dma.done.wait (%p1011_p7), %s208_s15, 128  }
  0x67   : > { %645 = vsyncadd (%p1011_p7), %s208_s15, 4294967168  ;;  %s216_s30 = sand.u32 1, %s660_s19   ;;  %p1012_p9 = scmp.ne.s32.totalorder %s1005_s28, 0 }
  0x68   : > { %s410_s6 = sshll.u32 %s216_s30, 1  ;;  %s217_s5 = scalar_lea.sflag [#allocation8], %s216_s30 }
  0x69   : > { %s220_s16 = scalar_lea.vmem [#allocation7], %s410_s6 }
  0x6a   : > { %647 = dma.done.wait (%p1012_p9), %s217_s5, 32  }
  0x6b   : > { %649 = vsyncadd (%p1012_p9), %s217_s5, 4294967264  ;;  %v249_v0 = vld [vmem:[%s211_s14] sm:$0xff]  ;;  %v271_v10 = vlaneseq  ;;  %v264_v12 = vld [vmem:[%s220_s16] sm:$0x1]  ;;  %s413_s7 = sshll.u32 %s680_s23, 7  ;;  %s247_s26 = scalar_lea.vmem [#allocation9], %s409_s24 }
  0x6c   : > { %250 = vadd.xlane.f32.xlu0 %v249_v0  ;;  %v252_v1 = vmul.f32 %v249_v0, %v249_v0  ;;  %v263_v11 = vld [vmem:[%s980_s2 + $0x1] sm:$0x1]  ;;  %v262_v14 = vld [vmem:[%s980_s2] sm:$0x1]  ;;  %v265_v16 = vld [vmem:[%s220_s16 + $0x1] sm:$0x1]  ;;  %s295_s27 = scalar_lea.hbm %s982_s4, %s413_s7 }
  0x6d   : > { %v272_v13 = vshrl.u32 %v271_v10, 7  ;;  %v267_v15 = vmul.f32 %v264_v12, %v263_v11  ;;  %v266_v17 = vmul.f32 %v264_v12, %v262_v14  ;;  %s297_s9 = sshll.u32 %s247_s26, 4  ;;  %s283_s0 = scalar_lea.sflag [#allocation6], %s906_s1  ;;  %s298_s9 = int_to_ptr.vmem [resolvable:$true] %s297_s9 }
  0x6e   : > { %s578_s15 = scalar_lea.vmem %s298_s9, 128  ;;  %p1013_p10 = scmp.ne.s32.totalorder %s999_s11, 0 }
  0x6f   : > { %v273_v18 = vsub.s32 0, %v272_v13  ;;  %v268_v19 = vadd.f32 %v267_v15, %v265_v16  ;;  %p579_p2 = scmp.ne.s32.totalorder %s298_s9, %s578_s15  ;;  %s693_s14 = smov [#allocation9]  }
  0x70   : > { %253 = vadd.xlane.f32.xlu0 %v252_v1  ;;  %s582_s30 = sshll.u32 %s693_s14, 4  ;;  %s583_s30 = int_to_ptr.vmem [resolvable:$false] %s582_s30 }
  0x71   : > { %v274_v21 = vrot.slane %v266_v17, %v273_v18  ;;  %v279_v24 = vrot.slane %v268_v19, %v273_v18  ;;  %p580_p1 = pnand %p579_p2, %p1013_p10  ;;  %s584_s23 = scalar_lea.vmem %s583_s30, 256 }
  0x72   : > { %p585_p6 = scmp.lt.s32.totalorder %s298_s9, %s583_s30  ;;  %p586_p8 = scmp.lt.s32.totalorder %s584_s23, %s578_s15 }
  0x73   : > { %p581_p11 = pneg %p580_p1 }
  0x74   : > { %p587_p0 = por %p586_p8, %p585_p6 }
  0x76   : > { %p588_p3 = pnand %p587_p0, %p581_p11 }
  0xf5   : > { %v251_v2 = vpop.xlane.xlu0 %250 }
  0xf6   : > { %v255_v3 = vmul.f32 0.03125, %v251_v2 }
  0xf8   : > { %v257_v5 = vmul.f32 %v255_v3, %v255_v3  ;;  %v269_v20 = vsub.f32 %v249_v0, %v255_v3 }
  0xf9   : > { %v254_v4 = vpop.xlane.xlu0 %253 }
  0xfa   : > { %v256_v6 = vmul.f32 0.03125, %v254_v4 }
  0xfc   : > { %v258_v7 = vsub.f32 %v256_v6, %v257_v5 }
  0xfe   : > { %v259_v8 = vmax.f32 %v258_v7, 0.0 }
 0x100   : > { %v260_v9 = vadd.f32 1e-05, %v259_v8 }
 0x102   : > { %512 = vrsqrt.f32 %v260_v9 }
 0x10f   : > { %v513_v22 = vpop.eup %512 }
 0x110   : > { %v270_v23 = vmul.f32 %v513_v22, %v269_v20 }
 0x112   : > { %v275_v25 = vmul.f32 %v274_v21, %v270_v23 }
 0x114   : > { %v280_v26 = vadd.f32 %v279_v24, %v275_v25 }
 0x116   : > { %281 = vst [vmem:[%s247_s26] sm:$0xff] %v280_v26 }
 0x117   : > { %591 = shalt.err (!%p588_p3)
}
 0x118   : > { %s592_s24 = scalar_lea.hbm %s295_s27, 128  ;;  %s596_s5 = scalar_lea.hbm %s982_s4, 256 }
 0x119   : > { %p593_p4 = scmp.ne.s32.totalorder %s295_s27, %s592_s24  ;;  %p597_p13 = scmp.lt.s32.totalorder %s295_s27, %s982_s4 }
 0x11a   : > { %p598_p7 = scmp.lt.s32.totalorder %s596_s5, %s592_s24 }
 0x11b   : > { %p594_p5 = pnand %p593_p4, %p1013_p10 }
 0x11c   : > { %p599_p9 = por %p598_p7, %p597_p13 }
 0x11d   : > { %p595_p12 = pneg %p594_p5 }
 0x11f   : > { %p600_p2 = pnand %p599_p9, %p595_p12 }
 0x121   : > { %603 = shalt.err (!%p600_p2)
}
 0x122   : > { %422 = dma.vmem_to_hbm [thread:$0]  (%p1013_p10), %s298_s9, 128, %s295_s27, %s283_s0  }
 0x123 PF: > { %s309_s10 = sand.u32 1, %s668_s21   ;;  %p1014_p1 = scmp.ne.s32.totalorder %s1000_s12, 0 }
 0x124   : > { %p1015_p11 = scmp.ge.s32.totalorder %s688_s25, 2  ;;  %s310_s28 = scalar_lea.sflag [#allocation6], %s309_s10 }
 0x126   : > { %p434_p6 = pnand %p1015_p11, %p1014_p1 }
 0x128   : > { %p435_p8 = pneg %p434_p6 }
 0x12a   : > { %651 = dma.done.wait (%p435_p8), %s310_s28, 128  }
 0x12b   : > { %653 = vsyncadd (%p435_p8), %s310_s28, 4294967168  ;;  %s27_s25 = sadd.s32 1, %s688_s25   ;;  %s1016_s11 = sld [smem:[#allocation16_spill]] }
 0x12c   : > { %p24_p0 = scmp.ge.s32.totalorder %s27_s25, 4   ;;  %s1017_s0 = sld [smem:[#allocation19_spill]] }
 0x12d   : > { %s1018_s23 = sld [smem:[#allocation17_spill]]  ;;  %s1020_s18 = smov %s660_s19 }
 0x12e   : > { %s1019_s24 = sld [smem:[#allocation18_spill]]  ;;  %s1021_s19 = smov %s664_s20 }
 0x12f   : > { %s1022_s20 = smov %s863_s29  ;;  %s1023_s21 = smov %s672_s22 }
 0x130   :  { %26 = sbr.rel (!%p24_p0) target bundleno = 16 (0x10), region = 90 }
 0x131   : > { %s1024_s22 = smov %s1016_s11 }
 0x135   :  { %315 = vsyncpa [#allocation5], 1 }
 0x136   :  { %317 = vsyncpa [#allocation5 + $0x1], 1 }
 0x137   :  { %318 = vsyncpa [#allocation8], 1 }
 0x138   :  { %320 = vsyncpa [#allocation8 + $0x1], 1 }
 0x139   :  { %321 = vsyncpa [#allocation6], 1 }
 0x13a   :  { %323 = vsyncpa [#allocation6 + $0x1], 1 }

</bundles_post_ra>
